<compile_context>
chip_gen: v7x
topology: tpu7x:2x2x1
jax: 0.10.0
libtpu: 0.0.40
codegen_flags: <defaults>
</compile_context>

<pallas_src>
import functools

import jax
import jax.numpy as jnp
from jax.experimental import pallas as pl
from jax.experimental.pallas import tpu as pltpu

HIDDEN = 768
NUM_CLASSES = 15
PADDED_CLASSES = 128        # lane-dense output width (15 -> 128)
_NEG_BIG = -1e30            # bias value for padded class columns


def _round_up(x, m):
    return ((x + m - 1) // m) * m


def _cdiv(a, b):
    return (a + b - 1) // b


def _device_kind():
    try:
        return jax.devices()[0].device_kind.lower()
    except Exception:  # no device visible at trace time — use safe defaults
        return ""


def _chip_has_bf16_eup():
    # v6e / v7x have a bf16 EUP path; v2–v5 do not (bf16 tanh would be emulated).
    kind = _device_kind()
    return not any(g in kind for g in ("v2", "v3", "v4", "v5"))


def _max_batch_tile():
    # v5e's scoped VMEM budget is the smallest -> cap the tile at 1024 rows there;
    # v6e / v7x (32 MiB scoped) comfortably double-buffer 2048-row bf16 blocks.
    return 1024 if "v5" in _device_kind() else 2048


def _pick_batch_tile(B, max_tile):
    if B <= 8:
        return 8
    tb = min(max_tile, _round_up(B, 8))
    if _cdiv(B, tb) < 2:
        # Ensure >= 2 grid steps so the "parallel" batch axis actually splits
        # across both TensorCores on v7x (and the DMA pipeline can overlap).
        tb = max(8, _round_up(_cdiv(B, 2), 8))
    return tb


def _fused_head_kernel(x_ref, w_ref, b_ref, o_ref, *, bf16_tanh):
    # x_ref: (TB, 768) bf16  attention-masked mean of the encoder output (pre-tanh)
    # w_ref: (768, 128) bf16 linear weight [in, out], zero in padded cols (resident)
    # b_ref: (1, 128)  f32   linear bias, -1e30 in padded cols (resident)
    # o_ref: (TB, 128) f32   log_softmax(logits); real classes in cols 0..14
    if bf16_tanh:
        # v6e / v7x: EUP has a bf16 path; pooled feeds the MXU in bf16 anyway.
        pooled = jnp.tanh(x_ref[...])
    else:
        # v5e: no bf16 VPU/EUP -> compute the pooler in f32, round once for the MXU.
        pooled = jnp.tanh(x_ref[...].astype(jnp.float32)).astype(jnp.bfloat16)
    # nn.Dropout(0.5) in eval mode is the identity.
    logits = jnp.dot(pooled, w_ref[...],
                     preferred_element_type=jnp.float32) + b_ref[...]
    # Numerically stable log_softmax over the padded class axis.  Padded columns
    # have logits == -1e30 (zero weight cols + -1e30 bias), so exp(shifted)
    # underflows to 0 and they do not perturb the 15 real classes.
    m = jnp.max(logits, axis=-1, keepdims=True)
    shifted = logits - m
    lse = jnp.log(jnp.sum(jnp.exp(shifted), axis=-1, keepdims=True))
    o_ref[...] = shifted - lse


def fused_classifier_head(pooled_pre_bf16, w_pad, b_pad):
    """pooled_pre_bf16: (B, 768) bf16 masked-mean pooled activation (pre-tanh).

    Returns log_softmax probabilities of shape (B, NUM_CLASSES) in f32.
    """
    B = pooled_pre_bf16.shape[0]
    TB = _pick_batch_tile(B, _max_batch_tile())
    grid = (_cdiv(B, TB),)          # ragged tail handled by masked edge blocks (no jnp.pad copy)
    kernel = functools.partial(_fused_head_kernel, bf16_tanh=_chip_has_bf16_eup())

    out = pl.pallas_call(
        kernel,
        out_shape=jax.ShapeDtypeStruct((B, PADDED_CLASSES), jnp.float32),
        grid_spec=pltpu.PrefetchScalarGridSpec(
            num_scalar_prefetch=0,
            grid=grid,
            in_specs=[
                pl.BlockSpec((TB, HIDDEN), lambda i: (i, 0)),
                pl.BlockSpec((HIDDEN, PADDED_CLASSES), lambda i: (0, 0)),  # resident
                pl.BlockSpec((1, PADDED_CLASSES), lambda i: (0, 0)),       # resident
            ],
            out_specs=pl.BlockSpec((TB, PADDED_CLASSES), lambda i: (i, 0)),
        ),
        compiler_params=pltpu.CompilerParams(
            # Independent batch tiles -> shard across both TensorCores on v7x.
            dimension_semantics=("parallel",),
            # 32 MiB scoped VMEM everywhere: lifts v5e's 16 MiB default so the
            # 1024-row tile double-buffers; matches the v6e/v7x default.
            vmem_limit_bytes=32 << 20,
        ),
    )(pooled_pre_bf16, w_pad, b_pad)

    # Column slice (15 of 128) fuses into the jit consumer; padded -1e30 columns
    # are never exposed outside this function.
    return out[:, :NUM_CLASSES]


def bert_classifier_forward(input_id, mask, params):
    # ---- Plain-JAX glue (stand-in for the external `bert(...)` call). ----
    # Embedding gather, attention-masked sum, masked-mean scale and the bf16 cast
    # form a single XLA fusion, so only the (B, 768) bf16 tensor touches HBM
    # before the Pallas head (no separate denom operand, no standalone cast pass).
    # TODO(synk): when the real encoder output is produced on-chip, fuse the
    # S-axis masked mean into the Pallas kernel (second "arbitrary" grid axis +
    # pl.when accumulator) to remove this (B, 768) intermediate entirely.
    emb = params["emb"][input_id]                          # (B, S, 768)
    m = mask.astype(jnp.float32)[..., None]                # (B, S, 1)
    summed = jnp.sum(emb * m, axis=1)                      # (B, 768)
    denom = jnp.clip(jnp.sum(m, axis=1), 1.0, None)        # (B, 1)
    pooled_pre = (summed / denom).astype(jnp.bfloat16)     # (B, 768) bf16
    # ---- Fused Pallas head: tanh pooler + dropout(eval) + linear + log_softmax ----
    return fused_classifier_head(pooled_pre, params["w_pad"], params["b_pad"])


def _reference_forward(input_id, mask, emb_table, w, b):
    """Pure-JAX reference mirroring the kernel's bf16 rounding (for correctness)."""
    emb = emb_table[input_id]
    m = mask.astype(jnp.float32)[..., None]
    summed = jnp.sum(emb * m, axis=1)
    denom = jnp.clip(jnp.sum(m, axis=1), 1.0, None)
    pooled_pre = (summed / denom).astype(jnp.bfloat16)
    pooled = jnp.tanh(pooled_pre.astype(jnp.float32)).astype(jnp.bfloat16)
    logits = jnp.dot(pooled, jnp.transpose(w).astype(jnp.bfloat16),
                     preferred_element_type=jnp.float32) + b[None, :]
    return jax.nn.log_softmax(logits, axis=1)


if __name__ == "__main__":
    key = jax.random.PRNGKey(0)
    k_emb, k_w, k_b, k_ids = jax.random.split(key, 4)

    B, S, VOCAB = 2, 8, 32

    # Deterministic synthetic parameters (shapes from the module's __init__).
    emb_table = jax.random.normal(k_emb, (VOCAB, HIDDEN), jnp.float32) * 0.02
    # nn.Linear(768, 15): weight is (15, 768); store transposed [in, out],
    # zero-padded to 128 output columns and cast to bf16 for the MXU.
    w = jax.random.normal(k_w, (NUM_CLASSES, HIDDEN), jnp.float32) * 0.02
    b = jax.random.normal(k_b, (NUM_CLASSES,), jnp.float32) * 0.02

    w_pad = jnp.zeros((HIDDEN, PADDED_CLASSES), jnp.bfloat16)
    w_pad = w_pad.at[:, :NUM_CLASSES].set(jnp.transpose(w).astype(jnp.bfloat16))
    b_pad = jnp.full((1, PADDED_CLASSES), _NEG_BIG, jnp.float32)
    b_pad = b_pad.at[0, :NUM_CLASSES].set(b)

    params = {"emb": emb_table, "w_pad": w_pad, "b_pad": b_pad}

    input_id = jax.random.randint(k_ids, (B, S), 0, VOCAB, dtype=jnp.int32)
    mask = jnp.ones((B, S), dtype=jnp.int32).at[1, 6:].set(0)  # ragged mask

    fwd = jax.jit(bert_classifier_forward)
    out = jax.block_until_ready(fwd(input_id, mask, params))

    assert out.shape == (B, NUM_CLASSES)
    # log_softmax rows must exponentiate-sum to ~1
    row_sums = jnp.sum(jnp.exp(out), axis=1)
    assert bool(jnp.all(jnp.abs(row_sums - 1.0) < 1e-4)), row_sums
    # match pure-JAX reference (same bf16 rounding points) within a loose tolerance
    ref = _reference_forward(input_id, mask, emb_table, w, b)
    assert bool(jnp.all(jnp.abs(out - ref) < 2e-2)), jnp.max(jnp.abs(out - ref))

    print("KERNEL_OK")
</pallas_src>

<mosaic_0001>
module attributes {stable_mosaic.version = 11 : i64} {
  func.func @_fused_head_kernel(%arg0: i32, %arg1: memref<8x768xbf16, #tpu.memory_space<vmem>>, %arg2: memref<768x128xbf16, #tpu.memory_space<vmem>>, %arg3: memref<1x128xf32, #tpu.memory_space<vmem>>, %arg4: memref<8x128xf32, #tpu.memory_space<vmem>>) attributes {dimension_semantics = [#tpu.dimension_semantics<parallel>], iteration_bounds = array<i64: 1>, scalar_prefetch = 0 : i64, scratch_operands = 0 : i64, tpu.core_type = #tpu.core_type<tc>, window_params = [{transform_indices = @transform_0, window_bounds = array<i64: 8, 768>}, {pipeline_mode = #tpu.pipeline_mode<synchronous>, transform_indices = @transform_1, window_bounds = array<i64: 768, 128>}, {pipeline_mode = #tpu.pipeline_mode<synchronous>, transform_indices = @transform_2, window_bounds = array<i64: 1, 128>}, {transform_indices = @transform_3, window_bounds = array<i64: 8, 128>}]} {
    %c0 = arith.constant 0 : index
    %c0_0 = arith.constant 0 : index
    %0 = vector.load %arg1[%c0, %c0_0] : memref<8x768xbf16, #tpu.memory_space<vmem>>, vector<8x768xbf16>
    %1 = math.tanh %0 : vector<8x768xbf16>
    %c0_1 = arith.constant 0 : index
    %c0_2 = arith.constant 0 : index
    %2 = vector.load %arg2[%c0_1, %c0_2] : memref<768x128xbf16, #tpu.memory_space<vmem>>, vector<768x128xbf16>
    %cst = arith.constant dense<0.000000e+00> : vector<8x128xf32>
    %3 = tpu.matmul %1, %2, %cst {dimension_numbers = #tpu.dot_dimension_numbers<[1], [0], [0], [1], [0, 0, 1, 1], [], []>} : vector<8x768xbf16>, vector<768x128xbf16>, vector<8x128xf32> -> vector<8x128xf32>
    %c0_3 = arith.constant 0 : index
    %c0_4 = arith.constant 0 : index
    %4 = vector.load %arg3[%c0_3, %c0_4] : memref<1x128xf32, #tpu.memory_space<vmem>>, vector<1x128xf32>
    %5 = vector.broadcast %4 : vector<1x128xf32> to vector<8x128xf32>
    %6 = arith.addf %3, %5 : vector<8x128xf32>
    %cst_5 = arith.constant dense<0xFF800000> : vector<8xf32>
    %7 = vector.multi_reduction <maximumf>, %6, %cst_5 [1] : vector<8x128xf32> to vector<8xf32>
    %8 = vector.shape_cast %7 : vector<8xf32> to vector<8x1xf32>
    %9 = vector.broadcast %8 : vector<8x1xf32> to vector<8x128xf32>
    %10 = arith.subf %6, %9 : vector<8x128xf32>
    %11 = math.exp %10 : vector<8x128xf32>
    %cst_6 = arith.constant dense<0.000000e+00> : vector<8xf32>
    %12 = vector.multi_reduction <add>, %11, %cst_6 [1] : vector<8x128xf32> to vector<8xf32>
    %13 = vector.shape_cast %12 : vector<8xf32> to vector<8x1xf32>
    %14 = math.log %13 : vector<8x1xf32>
    %15 = vector.broadcast %14 : vector<8x1xf32> to vector<8x128xf32>
    %16 = arith.subf %10, %15 : vector<8x128xf32>
    %c0_7 = arith.constant 0 : index
    %c0_8 = arith.constant 0 : index
    %17 = vector.load %arg4[%c0_7, %c0_8] : memref<8x128xf32, #tpu.memory_space<vmem>>, vector<8x128xf32>
    tpu.vector_store %arg4[%c0_7, %c0_8], %16 {strides = array<i32>} : memref<8x128xf32, #tpu.memory_space<vmem>>, vector<8x128xf32>,
    return
  }
  func.func @transform_0(%arg0: i32) -> (i32, i32) {
    %c0_i32 = arith.constant 0 : i32
    %c0_i32_0 = arith.constant 0 : i32
    return %arg0, %c0_i32 : i32, i32
  }
  func.func @transform_1(%arg0: i32) -> (i32, i32) {
    %c0_i32 = arith.constant 0 : i32
    %c0_i32_0 = arith.constant 0 : i32
    %c0_i32_1 = arith.constant 0 : i32
    return %c0_i32, %c0_i32_0 : i32, i32
  }
  func.func @transform_2(%arg0: i32) -> (i32, i32) {
    %c0_i32 = arith.constant 0 : i32
    %c0_i32_0 = arith.constant 0 : i32
    %c0_i32_1 = arith.constant 0 : i32
    return %c0_i32, %c0_i32_0 : i32, i32
  }
  func.func @transform_3(%arg0: i32) -> (i32, i32) {
    %c0_i32 = arith.constant 0 : i32
    %c0_i32_0 = arith.constant 0 : i32
    return %arg0, %c0_i32 : i32, i32
  }
}

</mosaic_0001>

<bundles_post_ra>
// kernel: bert_classifier_forward.1
= control target key start
LH: loop header
LB: loop body
LE: loop exit
PB: predicated region body
PF: predicated region fallthrough
CT: control target
= control target key end

     0   :  { %8 = vsyncpa [#allocation3], 0  ;;  %v841_v37 = vmov 1966171168   ;;  %v138_v39 = vlaneseq  ;;  %s1036_s0 = inlined_call_operand.vmem [shape: bf16[2,768], index: 0, kind: input, shape index: {}]   ;;  %s1037_s1 = inlined_call_operand.vmem [shape: bf16[768,128], index: 1, kind: input, shape index: {}]   ;;  %s1038_s2 = inlined_call_operand.vmem [shape: f32[1,128], index: 2, kind: input, shape index: {}]   ;;  %s1039_s3 = inlined_call_operand.hbm [shape: f32[2,128], index: 3, kind: output, shape index: {}]  }
   0x1   :  { %v757_v0 = vld [vmem:[%s1037_s1 + $0x40] sm:$0xff]   ;;  %v761_v4 = vld [vmem:[%s1037_s1 + $0x48] sm:$0xff]   ;;  %v765_v8 = vld [vmem:[%s1037_s1 + $0x50] sm:$0xff]   ;;  %v136_v38 = vunpack.c.l.s4 %v841_v37 }
   0x2   :  { %v758_v1 = vld [vmem:[%s1037_s1] sm:$0xff]   ;;  %687 = vmatprep.subr.bf16.mxu0 %v757_v0  ;;  %v762_v5 = vld [vmem:[%s1037_s1 + $0x8] sm:$0xff]   ;;  %v766_v9 = vld [vmem:[%s1037_s1 + $0x10] sm:$0xff]   ;;  %v139_v41 = vshrl.u32 %v138_v39, 7 }
   0x3   :  { %v759_v2 = vld [vmem:[%s1037_s1 + $0xc0] sm:$0xff]   ;;  %688 = vmatpush3.bf16.msra.mxu0 %v758_v1  ;;  %v763_v6 = vld [vmem:[%s1037_s1 + $0xc8] sm:$0xff]   ;;  %v767_v10 = vld [vmem:[%s1037_s1 + $0xd0] sm:$0xff]   ;;  %v137_v40 = vunpack.c.0.s8 %v136_v38 }
   0x4   :  { %v760_v3 = vld [vmem:[%s1037_s1 + $0x80] sm:$0xff]   ;;  %709 = vmatprep.subr.bf16.mxu1 %v759_v2  ;;  %689 = vmatprep.subr.bf16.mxu0 %v761_v4  ;;  %v764_v7 = vld [vmem:[%s1037_s1 + $0x88] sm:$0xff]   ;;  %v768_v11 = vld [vmem:[%s1037_s1 + $0x90] sm:$0xff]  }
   0x5   :  { %710 = vmatpush3.bf16.msra.mxu1 %v760_v3  ;;  %v769_v12 = vld [vmem:[%s1037_s1 + $0x58] sm:$0xff]   ;;  %v773_v16 = vld [vmem:[%s1037_s1 + $0x60] sm:$0xff]   ;;  %v777_v20 = vld [vmem:[%s1037_s1 + $0x68] sm:$0xff]   ;;  %v140_v43 = vsub.s32 %v137_v40, %v139_v41 }
   0x6   :  { %711 = vmatprep.subr.bf16.mxu1 %v763_v6  ;;  %v770_v13 = vld [vmem:[%s1037_s1 + $0x18] sm:$0xff]   ;;  %v774_v17 = vld [vmem:[%s1037_s1 + $0x20] sm:$0xff]   ;;  %v778_v21 = vld [vmem:[%s1037_s1 + $0x28] sm:$0xff]  }
   0x7   :  { %690 = vmatpush3.bf16.msra.mxu0 %v762_v5  ;;  %v771_v14 = vld [vmem:[%s1037_s1 + $0xd8] sm:$0xff]   ;;  %v775_v18 = vld [vmem:[%s1037_s1 + $0xe0] sm:$0xff]   ;;  %v779_v22 = vld [vmem:[%s1037_s1 + $0xe8] sm:$0xff]  }
   0x8   :  { %691 = vmatprep.subr.bf16.mxu0 %v765_v8  ;;  %v772_v15 = vld [vmem:[%s1037_s1 + $0x98] sm:$0xff]   ;;  %v776_v19 = vld [vmem:[%s1037_s1 + $0xa0] sm:$0xff]   ;;  %v780_v23 = vld [vmem:[%s1037_s1 + $0xa8] sm:$0xff]  }
   0x9   :  { %712 = vmatpush3.bf16.msra.mxu1 %v764_v7  ;;  %v781_v24 = vld [vmem:[%s1037_s1 + $0x70] sm:$0xff]   ;;  %v785_v28 = vld [vmem:[%s1037_s1 + $0x78] sm:$0xff]   ;;  %v16_v31 = vld [vmem:[%s1036_s0] sm:$0x3f] }
   0xa   :  { %713 = vmatprep.subr.bf16.mxu1 %v767_v10  ;;  %v782_v25 = vld [vmem:[%s1037_s1 + $0x30] sm:$0xff]   ;;  %v786_v29 = vld [vmem:[%s1037_s1 + $0x38] sm:$0xff]   ;;  %v17_v32 = vld [vmem:[%s1036_s0 + $0x6] sm:$0x3f]  ;;  %805 = vtanh.bf16 %v16_v31 }
   0xb   :  { %692 = vmatpush3.bf16.msra.mxu0 %v766_v9  ;;  %v783_v26 = vld [vmem:[%s1037_s1 + $0xf0] sm:$0xff]   ;;  %v787_v30 = vld [vmem:[%s1037_s1 + $0xf8] sm:$0xff]   ;;  %807 = vtanh.bf16 %v17_v32  ;;  %v789_v36 = vld [vmem:[%s1037_s1 + $0x140] sm:$0xff]  }
   0xc   :  { %693 = vmatprep.subr.bf16.mxu0 %v769_v12  ;;  %v784_v27 = vld [vmem:[%s1037_s1 + $0xb0] sm:$0xff]   ;;  %v788_v35 = vld [vmem:[%s1037_s1 + $0xb8] sm:$0xff]   ;;  %v790_v60 = vld [vmem:[%s1037_s1 + $0x100] sm:$0xff]  }
   0xd   :  { %714 = vmatpush3.bf16.msra.mxu1 %v768_v11  ;;  %v18_v33 = vld [vmem:[%s1036_s0 + $0xc] sm:$0x3f]  ;;  %v19_v34 = vld [vmem:[%s1036_s0 + $0x12] sm:$0x3f]  ;;  %v795_v4 = vld [vmem:[%s1037_s1 + $0x158] sm:$0xff]  }
   0xe   :  { %715 = vmatprep.subr.bf16.mxu1 %v771_v14  ;;  %809 = vtanh.bf16 %v18_v33  ;;  %v791_v61 = vld [vmem:[%s1037_s1 + $0x148] sm:$0xff]   ;;  %v793_v2 = vld [vmem:[%s1037_s1 + $0x150] sm:$0xff]   ;;  %v796_v5 = vld [vmem:[%s1037_s1 + $0x118] sm:$0xff]  }
   0xf   :  { %694 = vmatpush3.bf16.msra.mxu0 %v770_v13  ;;  %811 = vtanh.bf16 %v19_v34  ;;  %v792_v1 = vld [vmem:[%s1037_s1 + $0x108] sm:$0xff]   ;;  %v794_v3 = vld [vmem:[%s1037_s1 + $0x110] sm:$0xff]   ;;  %v797_v6 = vld [vmem:[%s1037_s1 + $0x160] sm:$0xff]  }
  0x10   :  { %695 = vmatprep.subr.bf16.mxu0 %v773_v16  ;;  %v798_v7 = vld [vmem:[%s1037_s1 + $0x120] sm:$0xff]   ;;  %v799_v8 = vld [vmem:[%s1037_s1 + $0x168] sm:$0xff]   ;;  %v801_v10 = vld [vmem:[%s1037_s1 + $0x170] sm:$0xff]  }
  0x11   :  { %716 = vmatpush3.bf16.msra.mxu1 %v772_v15  ;;  %v800_v9 = vld [vmem:[%s1037_s1 + $0x128] sm:$0xff]   ;;  %v802_v11 = vld [vmem:[%s1037_s1 + $0x130] sm:$0xff]   ;;  %v803_v12 = vld [vmem:[%s1037_s1 + $0x178] sm:$0xff]  }
  0x12   :  { %717 = vmatprep.subr.bf16.mxu1 %v775_v18  ;;  %v804_v14 = vld [vmem:[%s1037_s1 + $0x138] sm:$0xff]  }
  0x13   :  { %696 = vmatpush3.bf16.msra.mxu0 %v774_v17  ;;  %v638_v17 = vld [vmem:[%s1038_s2] ss:$0 sm:$0xff] }
  0x14   :  { %697 = vmatprep.subr.bf16.mxu0 %v777_v20 }
  0x15   :  { %718 = vmatpush3.bf16.msra.mxu1 %v776_v19  ;;  %v806_v42 = vpop.eup %805 }
  0x16   :  { %719 = vmatprep.subr.bf16.mxu1 %v779_v22  ;;  %v808_v44 = vpop.eup %807 }
  0x17   :  { %698 = vmatpush3.bf16.msra.mxu0 %v778_v21  ;;  %v131_v46 = vcombine.low %v806_v42, %v808_v44  ;;  %v132_v47 = vcombine.high %v806_v42, %v808_v44 }
  0x18   :  { %699 = vmatprep.subr.bf16.mxu0 %v781_v24 }
  0x19   :  { %720 = vmatpush3.bf16.msra.mxu1 %v780_v23  ;;  %v810_v45 = vpop.eup %809  ;;  %v141_v50 = vrot.slane %v131_v46, %v140_v43  ;;  %v148_v52 = vrot.slane %v132_v47, %v140_v43 }
  0x1a   :  { %721 = vmatprep.subr.bf16.mxu1 %v783_v26  ;;  %v812_v48 = vpop.eup %811 }
  0x1b   :  { %700 = vmatpush3.bf16.msra.mxu0 %v782_v25  ;;  %v133_v49 = vcombine.low %v810_v45, %v812_v48  ;;  %v134_v51 = vcombine.high %v810_v45, %v812_v48 }
  0x1c   :  { %701 = vmatprep.subr.bf16.mxu0 %v785_v28 }
  0x1d   :  { %722 = vmatpush3.bf16.msra.mxu1 %v784_v27  ;;  %v155_v53 = vrot.slane %v133_v49, %v140_v43  ;;  %v162_v54 = vrot.slane %v134_v51, %v140_v43 }
  0x1e   :  { %723 = vmatprep.subr.bf16.mxu1 %v787_v30 }
  0x1f   :  { %702 = vmatpush3.bf16.msra.mxu0 %v786_v29  ;;  %v164_v55 = vcombine.high %v141_v50, %v155_v53  ;;  %v163_v56 = vcombine.low %v141_v50, %v155_v53  ;;  %v166_v57 = vcombine.high %v148_v52, %v162_v54  ;;  %v165_v13 = vcombine.low %v148_v52, %v162_v54 }
  0x20   :  { %731 = vmatprep.subr.bf16.mxu0 %v789_v36 }
  0x21   :  { %724 = vmatpush3.bf16.msra.mxu1 %v788_v35  ;;  %v187_v58 = vrot.slane %v164_v55, %v140_v43  ;;  %v173_v59 = vrot.slane %v163_v56, %v140_v43  ;;  %v194_v0 = vrot.slane %v166_v57, %v140_v43  ;;  %v180_v15 = vrot.slane %v165_v13, %v140_v43 }
  0x23   :  { %523 = vmatprep.mubr.bf16.mxu0 %v187_v58  ;;  %v196_v62 = vcombine.high %v187_v58, %v187_v58  ;;  %v195_v63 = vcombine.high %v173_v59, %v173_v59 }
  0x24   :  { %524 = vmatmul.mubr.bf16.vlgmr.msra.gmra.mrb[0].mxu0 %v173_v59 }
  0x25   :  { %563 = vmatprep.mubr.bf16.mxu1 %v196_v62  ;;  %732 = vmatpush3.bf16.msra.mxu0 %v790_v60 }
  0x26   :  { %564 = vmatmul.mubr.bf16.vlgmr.msra.gmra.mrb[0].mxu1 %v195_v63  ;;  %733 = vmatprep.subr.bf16.mxu0 %v791_v61 }
  0x27   :  { %603 = vmatprep.mubr.bf16.mxu0 %v194_v0 }
  0x29   :  { %734 = vmatpush3.bf16.msra.mxu0 %v792_v1 }
  0x2a   :  { %735 = vmatprep.subr.bf16.mxu0 %v793_v2 }
  0x2d   :  { %736 = vmatpush3.bf16.msra.mxu0 %v794_v3 }
  0x2e   :  { %737 = vmatprep.subr.bf16.mxu0 %v795_v4 }
  0x31   :  { %738 = vmatpush3.bf16.msra.mxu0 %v796_v5 }
  0x32   :  { %739 = vmatprep.subr.bf16.mxu0 %v797_v6 }
  0x35   :  { %740 = vmatpush3.bf16.msra.mxu0 %v798_v7 }
  0x36   :  { %741 = vmatprep.subr.bf16.mxu0 %v799_v8 }
  0x39   :  { %742 = vmatpush3.bf16.msra.mxu0 %v800_v9 }
  0x3a   :  { %743 = vmatprep.subr.bf16.mxu0 %v801_v10 }
  0x3d   :  { %744 = vmatpush3.bf16.msra.mxu0 %v802_v11 }
  0x3e   :  { %745 = vmatprep.subr.bf16.mxu0 %v803_v12 }
  0x41   :  { %746 = vmatpush3.bf16.msra.mxu0 %v804_v14 }
  0x44   :  { %604 = vmatmul.mubr.bf16.vlgmr.msra.gmra.mrb[4].mxu0 %v180_v15 }
  0xf7   :  { %v703_v16 = vpop.f32.mrb[0].mxu0 }
  0xf8   :  { %v704_v18 = vpop.f32.mrb[1].mxu0 }
  0xf9   :  { %v705_v19 = vadd.f32 %v704_v18, %v703_v16  ;;  %v706_v20 = vpop.f32.mrb[2].mxu0  ;;  %v725_v21 = vpop.f32.mrb[0].mxu1 }
  0xfa   :  { %v707_v22 = vpop.f32.mrb[3].mxu0  ;;  %v726_v23 = vpop.f32.mrb[1].mxu1 }
  0xfb   :  { %v526_v24 = vadd.f32 %v705_v19, %v638_v17  ;;  %v727_v25 = vadd.f32 %v726_v23, %v725_v21  ;;  %v728_v26 = vpop.f32.mrb[2].mxu1 }
  0xfc   :  { %v729_v27 = vpop.f32.mrb[3].mxu1 }
  0xfd   :  { %v566_v28 = vadd.f32 %v727_v25, %v526_v24 }
 0x117   :  { %v747_v29 = vpop.f32.mrb[4].mxu0 }
 0x118   :  { %v748_v30 = vpop.f32.mrb[5].mxu0 }
 0x119   :  { %v749_v31 = vadd.f32 %v748_v30, %v747_v29  ;;  %v750_v32 = vpop.f32.mrb[6].mxu0 }
 0x11a   :  { %v751_v33 = vpop.f32.mrb[7].mxu0 }
 0x11b   :  { %v606_v34 = vadd.f32 %v749_v31, %v566_v28 }
 0x11d   :  { %611 = vmax.xlane.f32.xlu0 %v606_v34 }
 0x1aa   :  { %v612_v35 = vpop.xlane.xlu0 %611 }
 0x1ab   :  { %v613_v36 = vsub.f32 %v606_v34, %v612_v35 }
 0x1ad   :  { %v614_v37 = vmul.f32 1.442695, %v613_v36 }
 0x1af   :  { %813 = vpow2.f32 %v614_v37 }
 0x1b9   :  { %v814_v38 = vpop.eup %813 }
 0x1ba   :  { %616 = vadd.xlane.f32.xlu0 %v814_v38 }
 0x247   :  { %v617_v39 = vpop.xlane.xlu0 %616 }
 0x248   :  { %815 = vlog2.f32 %v617_v39 }
 0x252   :  { %v816_v40 = vpop.eup %815 }
 0x253   :  { %v619_v41 = vmul.f32 0.6931472, %v816_v40 }
 0x255   :  { %v620_v42 = vsub.f32 %v613_v36, %v619_v41 }
 0x257   :  { %621 = vst [vmem:[#allocation2] sm:$0xff] %v620_v42 }
 0x258   :  { %626 = vsyncadd [#allocation3], 96  ;;  %s842_s1 = smov [#allocation2]  }
 0x259   :  { %s627_s2 = sshll.u32 %s842_s1, 4  ;;  %s628_s2 = int_to_ptr.vmem [resolvable:$true] %s627_s2 }
 0x25a   :  { %s817_s8 = scalar_lea.vmem %s628_s2, 32  ;;  %s821_s9 = scalar_lea.vmem %s628_s2, 128 }
 0x25b   :  { %p818_p0 = scmp.ne.s32.totalorder %s628_s2, %s817_s8  ;;  %p822_p1 = scmp.lt.s32.totalorder %s628_s2, %s628_s2 }
 0x25c   :  { %p823_p2 = scmp.lt.s32.totalorder %s821_s9, %s817_s8 }
 0x25e   :  { %p824_p3 = por %p823_p2, %p822_p1 }
 0x260   :  { %p825_p4 = pnand %p824_p3, %p818_p0 }
 0x262   :  { %828 = shalt.err (!%p825_p4)
}
 0x263   :  { %s829_s12 = scalar_lea.hbm %s1039_s3, 32 }
 0x264   :  { %p830_p5 = scmp.ne.s32.totalorder %s1039_s3, %s829_s12  ;;  %p833_p6 = scmp.lt.u32.totalorder %s829_s12, %s1039_s3 }
 0x266   :  { %p835_p7 = pnand %p833_p6, %p830_p5 }
 0x268   :  { %838 = shalt.err (!%p835_p7)
}
 0x269   :  { %s843_s17 = smov 32   ;;  %s844_s18 = smov 2  }
 0x26a   :  { %633 = dma.vmem_to_hbm [thread:$0]  %s628_s2, 32, %s1039_s3, [#allocation3], %s843_s17, %s843_s17, %s844_s18  }
 0x26b   :  { %839 = dma.done.wait [#allocation3], 128  }
 0x26c   :  { %840 = vsyncadd [#allocation3], 4294967168 }
 0x26d   :  { %637 = vsyncpa [#allocation3], 1 }

</bundles_post_ra>
